<compile_context>
chip_gen: v6e
topology: v6e:2x2x1
jax: 0.10.0
libtpu: 0.0.40
codegen_flags: <defaults>
</compile_context>

<pallas_src>
import jax
import jax.numpy as jnp
from jax import lax
from jax.experimental import pallas as pl
from jax.experimental.pallas import tpu as pltpu


# --------------------------------------------------------------------------- #
# Kernel
# --------------------------------------------------------------------------- #
def _temporal_agg_kernel(x_ref, w_ref, o_ref):
    # x_ref : [TB, T*F]  (lane-dense x slab)
    # w_ref : [F, F]     (W, VMEM-resident, f32)
    # o_ref : [TB, F]
    f32 = jnp.float32
    tb = x_ref.shape[0]
    F = w_ref.shape[0]
    T = x_ref.shape[1] // F

    # query = last temporal step; upcast only this [TB, F] slice (no full-slab
    # f32 copy of the block).
    q = x_ref[:, (T - 1) * F:T * F].astype(f32)                     # [TB, F]

    # p[n, f] = sum_d W[f, d] * q[n, d]
    # Transposed contraction on the MXU -> no host-side transpose of W.
    p = lax.dot_general(
        q, w_ref[...],
        dimension_numbers=(((1,), (1,)), ((), ())),
        preferred_element_type=f32)                                  # [TB, F]

    # Online softmax over T fused with the weighted sum over T.
    # T is tiny, so a static Python unroll is used (static lane offsets).
    m = jnp.full((tb, 1), -jnp.inf, dtype=f32)                       # running max
    z = jnp.zeros((tb, 1), dtype=f32)                                # running denom
    acc = jnp.zeros((tb, F), dtype=f32)                              # running numerator
    for t in range(T):
        xt = x_ref[:, t * F:(t + 1) * F].astype(f32)                 # [TB, F]
        s = jnp.sum(xt * p, axis=-1, keepdims=True)                  # [TB, 1] score col
        m_new = jnp.maximum(m, s)
        alpha = jnp.exp(m - m_new)
        e = jnp.exp(s - m_new)
        z = z * alpha + e
        acc = acc * alpha + e * xt
        m = m_new

    # Exact normalization (denominator is only [TB, 1]; a real divide is cheap
    # and avoids the approx-reciprocal error flagged in the review).
    o_ref[...] = (acc / z).astype(o_ref.dtype)


# --------------------------------------------------------------------------- #
# Host-side wrapper
# --------------------------------------------------------------------------- #
def _round_up(v, m):
    v = int(v)
    return ((v + m - 1) // m) * m


def _cdiv(a, b):
    return -(-int(a) // int(b))


def _default_vmem_budget_bytes():
    # Generation-aware-ish budget: never more than ~1/4 of per-core VMEM
    # (v7x has only 64 MiB per TensorCore) and never more than 12 MiB, which
    # stays under every chip's default scoped limit even with our headroom.
    try:
        cap = int(pltpu.get_tpu_info().vmem_capacity_bytes)
    except Exception:
        cap = 64 * 1024 * 1024
    return max(4 * 1024 * 1024, min(12 * 1024 * 1024, cap // 4))


def temporal_aggregator(x, w_lambda, *, tile_rows=None, vmem_budget_bytes=None,
                        min_grid_steps=8):
    """x: [B, S, T, F], w_lambda: [F, F] (PyTorch layout). Returns [B, S, F]."""
    B, S, T, F = x.shape
    N = B * S
    TF = T * F

    if x.dtype not in (jnp.float32, jnp.bfloat16):
        x = x.astype(jnp.float32)
    dt = x.dtype
    isz = jnp.dtype(dt).itemsize
    granule = 16 if dt == jnp.bfloat16 else 8        # sublane multiple for TB

    # Free reshape (merges contiguous trailing dims) -> lane-dense stream.
    # Unlike the old jnp.pad, this adds NO extra HBM traffic.
    x2 = x.reshape(N, TF)
    w = jnp.asarray(w_lambda, dtype=jnp.float32)     # tiny [F, F]

    # ---- tile-size selection with (8,128)-aware VMEM accounting ----------- #
    tf_pad = _round_up(TF, 128)                      # lane padding of x block
    f_pad = _round_up(F, 128)                        # lane padding of [*, F] bufs
    if tile_rows is None:
        budget = (vmem_budget_bytes if vmem_budget_bytes is not None
                  else _default_vmem_budget_bytes())
        per_row = (
            2 * tf_pad * isz                         # x block, double-buffered
            + 2 * f_pad * isz                        # out block, double-buffered
            + (3 * f_pad + 4 * 128) * 4              # f32 temps: q/p/acc + [TB,1] cols
        )
        fixed = 2 * _round_up(F, 8) * f_pad * 4      # resident W (+ spare buffer)
        tile_rows = max(granule, (budget - fixed) // per_row)
        # Keep >= min_grid_steps blocks when the problem is big enough so both
        # v7x TensorCores get work and the input DMA pipeline has depth.
        tile_rows = min(tile_rows, _round_up(_cdiv(N, min_grid_steps), granule))

    tb = max(granule, min(int(tile_rows), _round_up(N, granule)))
    tb = _round_up(tb, granule)
    grid = (_cdiv(N, tb),)                           # ragged tail handled by
                                                     # Pallas block masking.

    out = pl.pallas_call(
        _temporal_agg_kernel,
        out_shape=jax.ShapeDtypeStruct((N, F), dt),
        grid=grid,
        in_specs=[
            pl.BlockSpec((tb, TF), lambda i: (i, 0)),   # streamed, double-buffered
            pl.BlockSpec((F, F), lambda i: (0, 0)),     # W, VMEM-resident
        ],
        out_specs=pl.BlockSpec((tb, F), lambda i: (i, 0)),
        compiler_params=pltpu.CompilerParams(
            dimension_semantics=("parallel",),          # megacore split on v7x
            vmem_limit_bytes=32 * 1024 * 1024,          # explicit headroom (v5e!)
        ),
    )(x2, w)

    return out.reshape(B, S, F)


# --------------------------------------------------------------------------- #
# Reference + demo
# --------------------------------------------------------------------------- #
def _reference(x, w):
    hi = jax.lax.Precision.HIGHEST
    q = x[:, :, -1, :]
    scores = jnp.einsum("bstf,fd,bsd->bst", x, w, q, precision=hi)
    weights = jax.nn.softmax(scores, axis=2)
    return jnp.einsum("bst,bstf->bsf", weights, x, precision=hi)


if __name__ == "__main__":
    key = jax.random.PRNGKey(0)
    k_x, k_w = jax.random.split(key, 2)

    # N = B*S = 102 is deliberately NOT a multiple of the tile so the ragged
    # (partial last block) path of the cdiv grid is exercised.
    batch, stocks, seq, embed_dim = 2, 51, 8, 32
    x = jax.random.normal(k_x, (batch, stocks, seq, embed_dim), dtype=jnp.float32)
    w_lambda = jax.random.normal(k_w, (embed_dim, embed_dim), dtype=jnp.float32)

    out = temporal_aggregator(x, w_lambda)      # auto-budgeted tile, multi-step grid
    out = jax.block_until_ready(out)

    ref = _reference(x, w_lambda)
    assert out.shape == (batch, stocks, embed_dim)
    assert jnp.allclose(out, ref, atol=2e-3, rtol=2e-3), "mismatch vs reference"

    print("KERNEL_OK")
</pallas_src>

<mosaic_0001>
module attributes {stable_mosaic.version = 11 : i64} {
  func.func @_temporal_agg_kernel(%arg0: i32, %arg1: memref<16x256xf32, #tpu.memory_space<vmem>>, %arg2: memref<32x32xf32, #tpu.memory_space<vmem>>, %arg3: memref<16x32xf32, #tpu.memory_space<vmem>>) attributes {dimension_semantics = [#tpu.dimension_semantics<parallel>], iteration_bounds = array<i64: 7>, scalar_prefetch = 0 : i64, scratch_operands = 0 : i64, tpu.core_type = #tpu.core_type<tc>, window_params = [{transform_indices = @transform_0, window_bounds = array<i64: 16, 256>}, {pipeline_mode = #tpu.pipeline_mode<synchronous>, transform_indices = @transform_1, window_bounds = array<i64: 32, 32>}, {transform_indices = @transform_2, window_bounds = array<i64: 16, 32>}]} {
    %c0 = arith.constant 0 : index
    %c224 = arith.constant 224 : index
    %0 = vector.load %arg1[%c0, %c224] : memref<16x256xf32, #tpu.memory_space<vmem>>, vector<16x32xf32>
    %c0_0 = arith.constant 0 : index
    %c0_1 = arith.constant 0 : index
    %1 = vector.load %arg2[%c0_0, %c0_1] : memref<32x32xf32, #tpu.memory_space<vmem>>, vector<32x32xf32>
    %cst = arith.constant dense<0.000000e+00> : vector<16x32xf32>
    %2 = tpu.matmul %0, %1, %cst {dimension_numbers = #tpu.dot_dimension_numbers<[1], [1], [0], [0], [0, 0, 1, 0], [], []>} : vector<16x32xf32>, vector<32x32xf32>, vector<16x32xf32> -> vector<16x32xf32>
    %cst_2 = arith.constant 0xFF800000 : f32
    %3 = vector.broadcast %cst_2 : f32 to vector<16x1xf32>
    %cst_3 = arith.constant 0.000000e+00 : f32
    %4 = vector.broadcast %cst_3 : f32 to vector<16x1xf32>
    %cst_4 = arith.constant 0.000000e+00 : f32
    %5 = vector.broadcast %cst_4 : f32 to vector<16x32xf32>
    %c0_5 = arith.constant 0 : index
    %c0_6 = arith.constant 0 : index
    %6 = vector.load %arg1[%c0_5, %c0_6] : memref<16x256xf32, #tpu.memory_space<vmem>>, vector<16x32xf32>
    %7 = arith.mulf %6, %2 : vector<16x32xf32>
    %cst_7 = arith.constant dense<0.000000e+00> : vector<16xf32>
    %8 = vector.multi_reduction <add>, %7, %cst_7 [1] : vector<16x32xf32> to vector<16xf32>
    %9 = vector.shape_cast %8 : vector<16xf32> to vector<16x1xf32>
    %10 = arith.maximumf %3, %9 : vector<16x1xf32>
    %11 = arith.subf %3, %10 : vector<16x1xf32>
    %12 = math.exp %11 : vector<16x1xf32>
    %13 = arith.subf %9, %10 : vector<16x1xf32>
    %14 = math.exp %13 : vector<16x1xf32>
    %15 = arith.mulf %4, %12 : vector<16x1xf32>
    %16 = arith.addf %15, %14 : vector<16x1xf32>
    %17 = vector.broadcast %12 : vector<16x1xf32> to vector<16x32xf32>
    %18 = arith.mulf %5, %17 : vector<16x32xf32>
    %19 = vector.broadcast %14 : vector<16x1xf32> to vector<16x32xf32>
    %20 = arith.mulf %19, %6 : vector<16x32xf32>
    %21 = arith.addf %18, %20 : vector<16x32xf32>
    %c0_8 = arith.constant 0 : index
    %c32 = arith.constant 32 : index
    %22 = vector.load %arg1[%c0_8, %c32] : memref<16x256xf32, #tpu.memory_space<vmem>>, vector<16x32xf32>
    %23 = arith.mulf %22, %2 : vector<16x32xf32>
    %cst_9 = arith.constant dense<0.000000e+00> : vector<16xf32>
    %24 = vector.multi_reduction <add>, %23, %cst_9 [1] : vector<16x32xf32> to vector<16xf32>
    %25 = vector.shape_cast %24 : vector<16xf32> to vector<16x1xf32>
    %26 = arith.maximumf %10, %25 : vector<16x1xf32>
    %27 = arith.subf %10, %26 : vector<16x1xf32>
    %28 = math.exp %27 : vector<16x1xf32>
    %29 = arith.subf %25, %26 : vector<16x1xf32>
    %30 = math.exp %29 : vector<16x1xf32>
    %31 = arith.mulf %16, %28 : vector<16x1xf32>
    %32 = arith.addf %31, %30 : vector<16x1xf32>
    %33 = vector.broadcast %28 : vector<16x1xf32> to vector<16x32xf32>
    %34 = arith.mulf %21, %33 : vector<16x32xf32>
    %35 = vector.broadcast %30 : vector<16x1xf32> to vector<16x32xf32>
    %36 = arith.mulf %35, %22 : vector<16x32xf32>
    %37 = arith.addf %34, %36 : vector<16x32xf32>
    %c0_10 = arith.constant 0 : index
    %c64 = arith.constant 64 : index
    %38 = vector.load %arg1[%c0_10, %c64] : memref<16x256xf32, #tpu.memory_space<vmem>>, vector<16x32xf32>
    %39 = arith.mulf %38, %2 : vector<16x32xf32>
    %cst_11 = arith.constant dense<0.000000e+00> : vector<16xf32>
    %40 = vector.multi_reduction <add>, %39, %cst_11 [1] : vector<16x32xf32> to vector<16xf32>
    %41 = vector.shape_cast %40 : vector<16xf32> to vector<16x1xf32>
    %42 = arith.maximumf %26, %41 : vector<16x1xf32>
    %43 = arith.subf %26, %42 : vector<16x1xf32>
    %44 = math.exp %43 : vector<16x1xf32>
    %45 = arith.subf %41, %42 : vector<16x1xf32>
    %46 = math.exp %45 : vector<16x1xf32>
    %47 = arith.mulf %32, %44 : vector<16x1xf32>
    %48 = arith.addf %47, %46 : vector<16x1xf32>
    %49 = vector.broadcast %44 : vector<16x1xf32> to vector<16x32xf32>
    %50 = arith.mulf %37, %49 : vector<16x32xf32>
    %51 = vector.broadcast %46 : vector<16x1xf32> to vector<16x32xf32>
    %52 = arith.mulf %51, %38 : vector<16x32xf32>
    %53 = arith.addf %50, %52 : vector<16x32xf32>
    %c0_12 = arith.constant 0 : index
    %c96 = arith.constant 96 : index
    %54 = vector.load %arg1[%c0_12, %c96] : memref<16x256xf32, #tpu.memory_space<vmem>>, vector<16x32xf32>
    %55 = arith.mulf %54, %2 : vector<16x32xf32>
    %cst_13 = arith.constant dense<0.000000e+00> : vector<16xf32>
    %56 = vector.multi_reduction <add>, %55, %cst_13 [1] : vector<16x32xf32> to vector<16xf32>
    %57 = vector.shape_cast %56 : vector<16xf32> to vector<16x1xf32>
    %58 = arith.maximumf %42, %57 : vector<16x1xf32>
    %59 = arith.subf %42, %58 : vector<16x1xf32>
    %60 = math.exp %59 : vector<16x1xf32>
    %61 = arith.subf %57, %58 : vector<16x1xf32>
    %62 = math.exp %61 : vector<16x1xf32>
    %63 = arith.mulf %48, %60 : vector<16x1xf32>
    %64 = arith.addf %63, %62 : vector<16x1xf32>
    %65 = vector.broadcast %60 : vector<16x1xf32> to vector<16x32xf32>
    %66 = arith.mulf %53, %65 : vector<16x32xf32>
    %67 = vector.broadcast %62 : vector<16x1xf32> to vector<16x32xf32>
    %68 = arith.mulf %67, %54 : vector<16x32xf32>
    %69 = arith.addf %66, %68 : vector<16x32xf32>
    %c0_14 = arith.constant 0 : index
    %c128 = arith.constant 128 : index
    %70 = vector.load %arg1[%c0_14, %c128] : memref<16x256xf32, #tpu.memory_space<vmem>>, vector<16x32xf32>
    %71 = arith.mulf %70, %2 : vector<16x32xf32>
    %cst_15 = arith.constant dense<0.000000e+00> : vector<16xf32>
    %72 = vector.multi_reduction <add>, %71, %cst_15 [1] : vector<16x32xf32> to vector<16xf32>
    %73 = vector.shape_cast %72 : vector<16xf32> to vector<16x1xf32>
    %74 = arith.maximumf %58, %73 : vector<16x1xf32>
    %75 = arith.subf %58, %74 : vector<16x1xf32>
    %76 = math.exp %75 : vector<16x1xf32>
    %77 = arith.subf %73, %74 : vector<16x1xf32>
    %78 = math.exp %77 : vector<16x1xf32>
    %79 = arith.mulf %64, %76 : vector<16x1xf32>
    %80 = arith.addf %79, %78 : vector<16x1xf32>
    %81 = vector.broadcast %76 : vector<16x1xf32> to vector<16x32xf32>
    %82 = arith.mulf %69, %81 : vector<16x32xf32>
    %83 = vector.broadcast %78 : vector<16x1xf32> to vector<16x32xf32>
    %84 = arith.mulf %83, %70 : vector<16x32xf32>
    %85 = arith.addf %82, %84 : vector<16x32xf32>
    %c0_16 = arith.constant 0 : index
    %c160 = arith.constant 160 : index
    %86 = vector.load %arg1[%c0_16, %c160] : memref<16x256xf32, #tpu.memory_space<vmem>>, vector<16x32xf32>
    %87 = arith.mulf %86, %2 : vector<16x32xf32>
    %cst_17 = arith.constant dense<0.000000e+00> : vector<16xf32>
    %88 = vector.multi_reduction <add>, %87, %cst_17 [1] : vector<16x32xf32> to vector<16xf32>
    %89 = vector.shape_cast %88 : vector<16xf32> to vector<16x1xf32>
    %90 = arith.maximumf %74, %89 : vector<16x1xf32>
    %91 = arith.subf %74, %90 : vector<16x1xf32>
    %92 = math.exp %91 : vector<16x1xf32>
    %93 = arith.subf %89, %90 : vector<16x1xf32>
    %94 = math.exp %93 : vector<16x1xf32>
    %95 = arith.mulf %80, %92 : vector<16x1xf32>
    %96 = arith.addf %95, %94 : vector<16x1xf32>
    %97 = vector.broadcast %92 : vector<16x1xf32> to vector<16x32xf32>
    %98 = arith.mulf %85, %97 : vector<16x32xf32>
    %99 = vector.broadcast %94 : vector<16x1xf32> to vector<16x32xf32>
    %100 = arith.mulf %99, %86 : vector<16x32xf32>
    %101 = arith.addf %98, %100 : vector<16x32xf32>
    %c0_18 = arith.constant 0 : index
    %c192 = arith.constant 192 : index
    %102 = vector.load %arg1[%c0_18, %c192] : memref<16x256xf32, #tpu.memory_space<vmem>>, vector<16x32xf32>
    %103 = arith.mulf %102, %2 : vector<16x32xf32>
    %cst_19 = arith.constant dense<0.000000e+00> : vector<16xf32>
    %104 = vector.multi_reduction <add>, %103, %cst_19 [1] : vector<16x32xf32> to vector<16xf32>
    %105 = vector.shape_cast %104 : vector<16xf32> to vector<16x1xf32>
    %106 = arith.maximumf %90, %105 : vector<16x1xf32>
    %107 = arith.subf %90, %106 : vector<16x1xf32>
    %108 = math.exp %107 : vector<16x1xf32>
    %109 = arith.subf %105, %106 : vector<16x1xf32>
    %110 = math.exp %109 : vector<16x1xf32>
    %111 = arith.mulf %96, %108 : vector<16x1xf32>
    %112 = arith.addf %111, %110 : vector<16x1xf32>
    %113 = vector.broadcast %108 : vector<16x1xf32> to vector<16x32xf32>
    %114 = arith.mulf %101, %113 : vector<16x32xf32>
    %115 = vector.broadcast %110 : vector<16x1xf32> to vector<16x32xf32>
    %116 = arith.mulf %115, %102 : vector<16x32xf32>
    %117 = arith.addf %114, %116 : vector<16x32xf32>
    %c0_20 = arith.constant 0 : index
    %c224_21 = arith.constant 224 : index
    %118 = vector.load %arg1[%c0_20, %c224_21] : memref<16x256xf32, #tpu.memory_space<vmem>>, vector<16x32xf32>
    %119 = arith.mulf %118, %2 : vector<16x32xf32>
    %cst_22 = arith.constant dense<0.000000e+00> : vector<16xf32>
    %120 = vector.multi_reduction <add>, %119, %cst_22 [1] : vector<16x32xf32> to vector<16xf32>
    %121 = vector.shape_cast %120 : vector<16xf32> to vector<16x1xf32>
    %122 = arith.maximumf %106, %121 : vector<16x1xf32>
    %123 = arith.subf %106, %122 : vector<16x1xf32>
    %124 = math.exp %123 : vector<16x1xf32>
    %125 = arith.subf %121, %122 : vector<16x1xf32>
    %126 = math.exp %125 : vector<16x1xf32>
    %127 = arith.mulf %112, %124 : vector<16x1xf32>
    %128 = arith.addf %127, %126 : vector<16x1xf32>
    %129 = vector.broadcast %124 : vector<16x1xf32> to vector<16x32xf32>
    %130 = arith.mulf %117, %129 : vector<16x32xf32>
    %131 = vector.broadcast %126 : vector<16x1xf32> to vector<16x32xf32>
    %132 = arith.mulf %131, %118 : vector<16x32xf32>
    %133 = arith.addf %130, %132 : vector<16x32xf32>
    %134 = vector.broadcast %128 : vector<16x1xf32> to vector<16x32xf32>
    %135 = arith.divf %133, %134 : vector<16x32xf32>
    %c0_23 = arith.constant 0 : index
    %c0_24 = arith.constant 0 : index
    %136 = vector.load %arg3[%c0_23, %c0_24] : memref<16x32xf32, #tpu.memory_space<vmem>>, vector<16x32xf32>
    tpu.vector_store %arg3[%c0_23, %c0_24], %135 {strides = array<i32>} : memref<16x32xf32, #tpu.memory_space<vmem>>, vector<16x32xf32>,
    return
  }
  func.func @transform_0(%arg0: i32) -> (i32, i32) {
    %c0_i32 = arith.constant 0 : i32
    %c0_i32_0 = arith.constant 0 : i32
    return %arg0, %c0_i32 : i32, i32
  }
  func.func @transform_1(%arg0: i32) -> (i32, i32) {
    %c0_i32 = arith.constant 0 : i32
    %c0_i32_0 = arith.constant 0 : i32
    %c0_i32_1 = arith.constant 0 : i32
    return %c0_i32, %c0_i32_0 : i32, i32
  }
  func.func @transform_2(%arg0: i32) -> (i32, i32) {
    %c0_i32 = arith.constant 0 : i32
    %c0_i32_0 = arith.constant 0 : i32
    return %arg0, %c0_i32 : i32, i32
  }
}

</mosaic_0001>

<bundles_post_ra>
// kernel: tpu_custom_call.1
= control target key start
LH: loop header
LB: loop body
LE: loop exit
PB: predicated region body
PF: predicated region fallthrough
CT: control target
= control target key end

     0   :  { %7 = vsyncpa [#allocation3], 0  ;;  %s1711_s0 = inlined_call_operand.hbm [shape: f32[102,256], index: 0, kind: input, shape index: {}]   ;;  %s1712_s1 = inlined_call_operand.hbm [shape: f32[32,32], index: 1, kind: input, shape index: {}]   ;;  %s1713_s2 = inlined_call_operand.vmem [shape: f32[102,32], index: 2, kind: output, shape index: {}]  }
   0x1   :  { %9 = vsyncpa [#allocation3 + $0x1], 0 }
   0x2   :  { %10 = vsyncpa [#allocation5], 0  ;;  %s1339_s9 = smov 0   ;;  %s1341_s10 = smov 0  }
   0x3   :  { %s1343_s11 = smov 0   ;;  %s1345_s12 = smov 0  }
   0x4 LB: > { %s1358_s13 = sadd.s32 4294967295, %s1281_s12   ;;  %s1361_s14 = sadd.s32 1, %s1281_s12   ;;  %s1281_s12 = sphi %s1345_s12, %s1724_s12   ;;  %s1277_s11 = sphi %s1343_s11, %s1723_s11   ;;  %s1273_s10 = sphi %s1341_s10, %s1722_s10   ;;  %s1269_s9 = sphi %s1339_s9, %s1721_s9  }
   0x5   : > { %s20_s15 = ssub.s32 %s1281_s12, %s1361_s14  ;;  %s23_s16 = sadd.s32 1, %s1277_s11 }
   0x6   : > { %p21_p0 = scmp.eq.s32.totalorder %s20_s15, 0  ;;  %p30_p1 = scmp.ne.s32.totalorder %s1277_s11, %s1273_s10 }
   0x7   : > { %p31_p2 = scmp.eq.s32.totalorder %s1281_s12, 0  ;;  %p36_p3 = scmp.ne.s32.totalorder %s1273_s10, %s1269_s9 }
   0x8   : > { %s1371_s17 = scalar_select %p21_p0, %s1277_s11, %s23_s16  }
   0x9   : > { %p1373_p4 = por %p31_p2, %p30_p1  ;;  %p37_p5 = scmp.eq.s32.totalorder %s1358_s13, 0 }
   0xa   : > { %p81_p6 = scmp.eq.s32.totalorder %s1358_s13, 6  ;;  %p914_p7 = scmp.ge.s32.totalorder %s1281_s12, 1 }
   0xb   : > { %p1382_p8 = por %p37_p5, %p36_p3  ;;  %p94_p9 = scmp.lt.s32.totalorder %s1281_s12, 8 }
   0xc   : > { %p1387_p10 = por %p81_p6, %p30_p1  ;;  %s1315_s22 = smov [#allocation4]  }
   0xd   : > { %s1716_s19 = scalar_select %p1382_p8, 1, 0 }
   0xe   : > { %s1717_s20 = scalar_select %p1387_p10, 1, 0 }
   0xf   : > { %p1391_p11 = pnand %p914_p7, %p94_p9  ;;  %s106_s23 = sshll.u32 %s1315_s22, 4  ;;  %s107_s23 = int_to_ptr.vmem [resolvable:$true] %s106_s23 }
  0x10   : > { %s1170_s24 = scalar_lea.vmem %s107_s23, 512  ;;  %p1178_p6 = scmp.lt.s32.totalorder %s107_s23, %s107_s23 }
  0x11   : > { %p981_p12 = pneg %p1391_p11  ;;  %p1171_p2 = scmp.ne.s32.totalorder %s107_s23, %s1170_s24 }
  0x12   : > { %p1179_p8 = scmp.lt.s32.totalorder %s1170_s24, %s1170_s24 }
  0x13   : > { %p982_p13 = pnand %p981_p12, %p37_p5 }
  0x14   : > { %p1180_p10 = por %p1179_p8, %p1178_p6 }
  0x15   : > { %p1161_p0 = pneg %p982_p13 }
  0x17   : > { %p1173_p3 = pnand %p1171_p2, %p1161_p0 }
  0x19   : > { %p1174_p1 = pneg %p1173_p3 }
  0x1b   : > { %p1181_p7 = pnand %p1180_p10, %p1174_p1 }
  0x1d   : > { %1184 = shalt.err (!%p1181_p7)
}
  0x1e   : > { %s1316_s25 = smov 128   ;;  %s1317_s26 = smov 8  }
  0x1f   : > { %984 = dma.hbm_to_vmem [thread:$0]  (!%p982_p13), %s1712_s1, 512, %s107_s23, [#allocation5], %s1316_s25, %s1316_s25, %s1317_s26  }
  0x20   : > { %p916_p9 = scmp.ge.s32.totalorder %s1281_s12, 7 }
  0x22   : > { %116 = sbr.rel (%p916_p9) target bundleno = 71 (0x47), region = 20 }
  0x27   : > { %119 = sbr.rel (!%p1373_p4) target bundleno = 71 (0x47), region = 24  ;;  %s120_s29 = sand.u32 (%p1373_p4), 1, %s1277_s11  }
  0x28   : > { %s918_s30 = sshll.u32 (%p1373_p4), %s1281_s12, 1  ;;  %s917_s3 = sshll.u32 (%p1373_p4), %s120_s29, 5 }
  0x29   : > { %s126_s4 = ssub.s32 (%p1373_p4), 13, %s918_s30  ;;  %s1410_s7 = scalar_lea.sflag (%p1373_p4), [#allocation3], %s120_s29 }
  0x2a   : > { %p127_p8 = scmp.lt.s32.totalorder (%p1373_p4), %s126_s4, 2  ;;  %s124_s8 = scalar_lea.vmem (%p1373_p4), [#allocation2], %s917_s3 }
  0x2c   : > { %s1726_s4 = smov (!%p127_p8, %s126_s4), 2 }
  0x2d   : > { %s1407_s5 = sshll.u32 %s1726_s4, 8 }
  0x2e   : > { %s132_s6 = ssub.s32 512, %s1407_s5 }
  0x2f   : > { %133 = vsyncadd %s1410_s7, %s132_s6  ;;  %p921_p4 = scmp.ne.s32.totalorder %s1407_s5, 0  ;;  %s955_s9 = sshll.u32 %s1281_s12, 9 }
  0x30   : > { %s1418_s18 = scalar_lea.hbm %s1711_s0, %s955_s9  ;;  %s139_s22 = sshll.u32 %s124_s8, 4  ;;  %s1420_s22 = int_to_ptr.vmem [resolvable:$true] %s139_s22 }
  0x31   : > { %s1185_s23 = scalar_lea.hbm %s1418_s18, %s1407_s5  ;;  %s1189_s12 = scalar_lea.hbm %s1711_s0, 3328 }
  0x32   : > { %p1186_p10 = scmp.ne.s32.totalorder %s1418_s18, %s1185_s23  ;;  %p1190_p0 = scmp.lt.s32.totalorder %s1418_s18, %s1711_s0 }
  0x33   : > { %p1191_p2 = scmp.lt.s32.totalorder %s1189_s12, %s1185_s23 }
  0x34   : > { %p1187_p12 = pnand %p1186_p10, %p921_p4 }
  0x35   : > { %p1192_p3 = por %p1191_p2, %p1190_p0 }
  0x36   : > { %p1188_p13 = pneg %p1187_p12 }
  0x38   : > { %p1193_p1 = pnand %p1192_p3, %p1188_p13 }
  0x3a   : > { %1196 = shalt.err (!%p1193_p1)
}
  0x3b   : > { %s1197_s28 = scalar_lea.vmem %s1420_s22, %s1407_s5  ;;  %s1318_s29 = smov [#allocation2]  }
  0x3c   : > { %p1198_p6 = scmp.ne.s32.totalorder %s1420_s22, %s1197_s28  ;;  %s1201_s30 = sshll.u32 %s1318_s29, 4  ;;  %s1202_s30 = int_to_ptr.vmem [resolvable:$false] %s1201_s30 }
  0x3d   : > { %s1203_s3 = scalar_lea.vmem %s1202_s30, 1024  ;;  %p1204_p8 = scmp.lt.s32.totalorder %s1420_s22, %s1202_s30 }
  0x3e   : > { %p1199_p7 = pnand %p1198_p6, %p921_p4  ;;  %p1205_p10 = scmp.lt.s32.totalorder %s1203_s3, %s1197_s28 }
  0x40   : > { %p1200_p9 = pneg %p1199_p7  ;;  %p1206_p12 = por %p1205_p10, %p1204_p8 }
  0x42   : > { %p1207_p0 = pnand %p1206_p12, %p1200_p9 }
  0x44   : > { %1210 = shalt.err (!%p1207_p0)
}
  0x45   : > { %s1319_s4 = smov 256   ;;  %s1320_s6 = smov 16  }
  0x46   : > { %145 = dma.hbm_to_vmem [thread:$0]  (%p921_p4), %s1418_s18, %s1407_s5, %s1420_s22, %s1410_s7, %s1319_s4, %s1319_s4, %s1320_s6  }
  0x47 PF: > { %151 = sbr.rel (%p1391_p11) target bundleno = 985 (0x3d9), region = 28  ;;  %s1449_s8 = sand.u32 (!%p1391_p11), 1, %s1273_s10  }
  0x48   : > { %s927_s9 = sshll.u32 (!%p1391_p11), %s1449_s8, 5  ;;  %s154_s15 = scalar_lea.sflag (!%p1391_p11), [#allocation3], %s1449_s8 }
  0x49   : > { %s1453_s16 = scalar_lea.vmem (!%p1391_p11), [#allocation2], %s927_s9  ;;  %p1719_p13 = scmp.ne.s32.totalorder (!%p1391_p11), %s1716_s19, 0 }
  0x4c   : > { %1260 = dma.done.wait (%p1719_p13), %s154_s15, 512  }
  0x4d   : > { %1262 = vsyncadd (%p1719_p13), %s154_s15, 4294966784 }
  0x4e   : > { %1264 = dma.done.wait (%p37_p5), [#allocation5], 512  }
  0x4f   : > { %1266 = vsyncadd (%p37_p5), [#allocation5], 4294966784  ;;  %vm204_vm0 = vcmask 261120   ;;  %v1464_v0 = vld [vmem:[%s1453_s16 + $0x8] sm:$0xff]  ;;  %v197_v1 = vld [vmem:[#allocation4 + $0x18] sm:$0xff]  ;;  %s1321_s21 = smov 32  }
  0x50   : > { %200 = vrot.lane.b32.xlu0 %v1464_v0, %s1321_s21  ;;  %965 = vmatprep.subr.msk.mxu0 %vm204_vm0, %v197_v1  ;;  %v196_v2 = vld [vmem:[#allocation4 + $0x10] sm:$0xff]  ;;  %v1470_v3 = vld [vmem:[%s1453_s16 + $0x18] sm:$0xff]  ;;  %v195_v4 = vld [vmem:[#allocation4 + $0x8] sm:$0xff]  ;;  %s1322_s19 = smov 64   ;;  %s1323_s5 = smov 96  }
  0x51   : > { %966 = vmatpush3.xpose.msk.msra.mxu0 %vm204_vm0, %v197_v1  ;;  %v194_v5 = vld [vmem:[#allocation4] sm:$0xff]  ;;  %v1495_v13 = vld [vmem:[%s1453_s16 + $0x10] sm:$0xff]  ;;  %s929_s7 = sshll.u32 %s1449_s8, 4  ;;  %p1720_p5 = scmp.ne.s32.totalorder %s1717_s20, 0 }
  0x52   : > { %967 = vmatprep.subr.msk.mxu0 %vm204_vm0, %v196_v2  ;;  %v1490_v10 = vld [vmem:[%s1453_s16] sm:$0xff]  ;;  %s1661_s18 = scalar_lea.vmem [#allocation6], %s929_s7   ;;  %s937_s22 = sshll.u32 (%p1720_p5), %s1358_s13, 1 }
  0x53   : > { %s956_s23 = sshll.u32 (%p1720_p5), %s1358_s13, 4  ;;  %s680_s24 = ssub.s32 (%p1720_p5), 13, %s937_s22 }
  0x54   : > { %202 = vrot.lane.b32.xlu0 %v1470_v3, %s1321_s21  ;;  %s1674_s26 = scalar_lea.vmem (%p1720_p5), %s1713_s2, %s956_s23   ;;  %p681_p11 = scmp.lt.s32.totalorder (%p1720_p5), %s680_s24, 2 }
  0x55   : > { %968 = vmatpush3.xpose.msk.msra.mxu0 %vm204_vm0, %v196_v2 }
  0x56   : > { %969 = vmatprep.subr.msk.mxu0 %vm204_vm0, %v195_v4 }
  0x59   : > { %970 = vmatpush3.xpose.msk.msra.mxu0 %vm204_vm0, %v195_v4 }
  0x5a   : > { %971 = vmatprep.subr.msk.mxu0 %vm204_vm0, %v194_v5 }
  0x5d   : > { %972 = vmatpush3.xpose.msk.msra.mxu0 %vm204_vm0, %v194_v5 }
  0xc2   : > { %v201_v6 = vpop.permute.xlu0 %200 }
  0xc3   : > { %973 = vmatprep.mubr.msk.f32.mxu0 %vm204_vm0, %v201_v6 }
  0xc6   : > { %v203_v7 = vpop.permute.xlu0 %202 }
  0xc7   : > { %974 = vmatmul.mubr.msk.f32.vlgmr.msra.gmra.mxu0 %vm204_vm0, %v203_v7 }
 0x187   : > { %v975_v8 = vpop.f32.mrf.mxu0 }
 0x188   : > { %330 = vrot.lane.b32.xlu1 %v975_v8, %s1321_s21  ;;  %v299_v14 = vmul.f32 %v975_v8, %v1495_v13  ;;  %v491_v36 = vmul.f32 %v975_v8, %v1470_v3 }
 0x189   : > { %v287_v9 = vpop.f32.mrf.mxu0 }
 0x18a   : > { %382 = vrot.lane.b32.xlu0 %v287_v9, %s1322_s19  ;;  %v298_v11 = vmul.f32 %v1490_v10, %v287_v9  ;;  %v303_v15 = vsel %vm204_vm0, %v299_v14, 0.0  ;;  %v490_v34 = vmul.f32 %v287_v9, %v1464_v0  ;;  %v495_v37 = vsel %vm204_vm0, %v491_v36, 0.0 }
 0x18c   : > { %384 = vrot.lane.b32.xlu1 %v975_v8, %s1322_s19  ;;  %v300_v12 = vsel %vm204_vm0, %v298_v11, 0.0  ;;  %v492_v35 = vsel %vm204_vm0, %v490_v34, 0.0 }
 0x18e   : > { %436 = vrot.lane.b32.xlu0 %v287_v9, %s1323_s5 }
 0x190   : > { %438 = vrot.lane.b32.xlu1 %v975_v8, %s1323_s5 }
 0x194   : > { %328 = vrot.lane.b32.xlu1 %v287_v9, %s1321_s21 }
 0x1ad   : > { %301 = vadd.xlane.f32.xlu0 %v300_v12 }
 0x1b8   : > { %304 = vadd.xlane.f32.xlu1 %v303_v15 }
 0x1fa   : > { %v331_v16 = vpop.permute.xlu1 %330 }
 0x1fb   : > { %v335_v17 = vmul.f32 %v331_v16, %v1495_v13  ;;  %v523_v24 = vmul.f32 %v331_v16, %v1470_v3 }
 0x1fc   : > { %v383_v22 = vpop.permute.xlu0 %382 }
 0x1fd   : > { %340 = vrot.lane.b32.xlu1 %v335_v17, %s1323_s5  ;;  %v388_v26 = vmul.f32 %v383_v22, %v1490_v10  ;;  %v570_v31 = vmul.f32 %v383_v22, %v1464_v0 }
 0x1fe   : > { %v385_v18 = vpop.permute.xlu1 %384 }
 0x1ff   : > { %v389_v19 = vmul.f32 %v385_v18, %v1495_v13  ;;  %v571_v27 = vmul.f32 %v385_v18, %v1470_v3 }
 0x200   : > { %v437_v28 = vpop.permute.xlu0 %436 }
 0x201   : > { %394 = vrot.lane.b32.xlu1 %v389_v19, %s1322_s19  ;;  %v442_v29 = vmul.f32 %v437_v28, %v1490_v10  ;;  %v618_v32 = vmul.f32 %v437_v28, %v1464_v0 }
 0x202   : > { %v439_v20 = vpop.permute.xlu1 %438 }
 0x203   : > { %v443_v21 = vmul.f32 %v439_v20, %v1495_v13  ;;  %v619_v33 = vmul.f32 %v439_v20, %v1470_v3 }
 0x205   : > { %448 = vrot.lane.b32.xlu1 %v443_v21, %s1321_s21 }
 0x206   : > { %v329_v23 = vpop.permute.xlu1 %328 }
 0x207   : > { %v334_v25 = vmul.f32 %v329_v23, %v1490_v10  ;;  %v522_v30 = vmul.f32 %v329_v23, %v1464_v0 }
 0x209   : > { %528 = vrot.lane.b32.xlu1 %v523_v24, %s1323_s5  ;;  %338 = vrot.lane.b32.xlu0 %v334_v25, %s1323_s5 }
 0x20d   : > { %576 = vrot.lane.b32.xlu1 %v571_v27, %s1322_s19  ;;  %392 = vrot.lane.b32.xlu0 %v388_v26, %s1322_s19 }
 0x211   : > { %526 = vrot.lane.b32.xlu1 %v522_v30, %s1323_s5  ;;  %446 = vrot.lane.b32.xlu0 %v442_v29, %s1321_s21 }
 0x215   : > { %574 = vrot.lane.b32.xlu1 %v570_v31, %s1322_s19 }
 0x219   : > { %622 = vrot.lane.b32.xlu1 %v618_v32, %s1321_s21 }
 0x21d   : > { %624 = vrot.lane.b32.xlu1 %v619_v33, %s1321_s21 }
 0x230   : > { %493 = vadd.xlane.f32.xlu0 %v492_v35 }
 0x234   : > { %496 = vadd.xlane.f32.xlu0 %v495_v37 }
 0x236   : > { %v1529_v43 = vpop.xlane.xlu0 %301 }
 0x237   : > { %v306_v9 = vsub.f32 -inf, %v1529_v43  ;;  %v312_v25 = vsub.f32 %v1529_v43, %v1529_v43 }
 0x239   : > { %v308_v19 = vmul.f32 1.442695, %v306_v9  ;;  %v314_v35 = vmul.f32 1.442695, %v312_v25 }
 0x241   : > { %v305_v38 = vpop.xlane.xlu1 %304 }
 0x242   : > { %v307_v1 = vsub.f32 -inf, %v305_v38  ;;  %v313_v5 = vsub.f32 %v305_v38, %v305_v38 }
 0x244   : > { %v310_v4 = vmul.f32 1.442695, %v307_v1  ;;  %v316_v11 = vmul.f32 1.442695, %v313_v5 }
 0x246   : > { %1091 = vpow2.f32 %v310_v4 }
 0x247   : > { %1093 = vpow2.f32 %v316_v11 }
 0x253   : > { %v1092_v31 = vpop.eup %1091 }
 0x26f   : > { %v341_v39 = vpop.permute.xlu1 %340 }
 0x270   : > { %v347_v40 = vsel %vm204_vm0, %v341_v39, 0.0 }
 0x271   : > { %348 = vadd.xlane.f32.xlu1 %v347_v40 }
 0x273   : > { %v395_v41 = vpop.permute.xlu1 %394 }
 0x274   : > { %v401_v42 = vsel %vm204_vm0, %v395_v41, 0.0  ;;  %v1552_v41 = vmul.f32 0.0, %v1092_v31 }
 0x275   : > { %402 = vadd.xlane.f32.xlu0 %v401_v42 }
 0x277   : > { %v449_v44 = vpop.permute.xlu1 %448 }
 0x278   : > { %v455_v45 = vsel %vm204_vm0, %v449_v44, 0.0 }
 0x279   : > { %456 = vadd.xlane.f32.xlu0 %v455_v45 }
 0x27b   : > { %v529_v46 = vpop.permute.xlu1 %528  ;;  %v339_v47 = vpop.permute.xlu0 %338 }
 0x27c   : > { %v344_v48 = vsel %vm204_vm0, %v339_v47, 0.0  ;;  %v535_v57 = vsel %vm204_vm0, %v529_v46, 0.0  ;;  %v1554_v47 = vpop.eup %1093 }
 0x27d   : > { %345 = vadd.xlane.f32.xlu0 %v344_v48 }
 0x27f   : > { %v577_v49 = vpop.permute.xlu1 %576  ;;  %v393_v50 = vpop.permute.xlu0 %392 }
 0x280   : > { %v398_v51 = vsel %vm204_vm0, %v393_v50, 0.0  ;;  %v583_v61 = vsel %vm204_vm0, %v577_v49, 0.0 }
 0x281   : > { %399 = vadd.xlane.f32.xlu0 %v398_v51 }
 0x283   : > { %v527_v52 = vpop.permute.xlu1 %526  ;;  %v447_v53 = vpop.permute.xlu0 %446 }
 0x284   : > { %v452_v54 = vsel %vm204_vm0, %v447_v53, 0.0  ;;  %v532_v60 = vsel %vm204_vm0, %v527_v52, 0.0 }
 0x285   : > { %453 = vadd.xlane.f32.xlu0 %v452_v54 }
 0x287   : > { %v575_v55 = vpop.permute.xlu1 %574 }
 0x288   : > { %v580_v56 = vsel %vm204_vm0, %v575_v55, 0.0 }
 0x289   : > { %581 = vadd.xlane.f32.xlu1 %v580_v56  ;;  %536 = vadd.xlane.f32.xlu0 %v535_v57 }
 0x28b   : > { %v623_v58 = vpop.permute.xlu1 %622 }
 0x28c   : > { %v628_v59 = vsel %vm204_vm0, %v623_v58, 0.0 }
 0x28d   : > { %629 = vadd.xlane.f32.xlu1 %v628_v59  ;;  %533 = vadd.xlane.f32.xlu0 %v532_v60 }
 0x28f   : > { %v625_v62 = vpop.permute.xlu1 %624 }
 0x290   : > { %v631_v63 = vsel %vm204_vm0, %v625_v62, 0.0 }
 0x291   : > { %584 = vadd.xlane.f32.xlu0 %v583_v61 }
 0x295   : > { %632 = vadd.xlane.f32.xlu0 %v631_v63 }
 0x2b9   : > { %v1541_v2 = vpop.xlane.xlu0 %493 }
 0x2bd   : > { %v497_v6 = vpop.xlane.xlu0 %496 }
 0x2fa   : > { %v349_v7 = vpop.xlane.xlu1 %348 }
 0x2fb   : > { %v351_v8 = vmax.f32 %v305_v38, %v349_v7 }
 0x2fd   : > { %v353_v12 = vsub.f32 %v305_v38, %v351_v8  ;;  %v359_v14 = vsub.f32 %v349_v7, %v351_v8 }
 0x2fe   : > { %v403_v15 = vpop.xlane.xlu0 %402 }
 0x2ff   : > { %v356_v16 = vmul.f32 1.442695, %v353_v12  ;;  %v362_v17 = vmul.f32 1.442695, %v359_v14  ;;  %v405_v18 = vmax.f32 %v351_v8, %v403_v15 }
 0x301   : > { %1095 = vpow2.f32 %v356_v16  ;;  %v407_v20 = vsub.f32 %v351_v8, %v405_v18  ;;  %v413_v21 = vsub.f32 %v403_v15, %v405_v18 }
 0x302   : > { %1097 = vpow2.f32 %v362_v17  ;;  %v457_v22 = vpop.xlane.xlu0 %456 }
 0x303   : > { %v410_v23 = vmul.f32 1.442695, %v407_v20  ;;  %v459_v24 = vmax.f32 %v405_v18, %v457_v22  ;;  %1099 = vpow2.f32 %v308_v19  ;;  %v416_v26 = vmul.f32 1.442695, %v413_v21 }
 0x305   : > { %1101 = vpow2.f32 %v410_v23  ;;  %v461_v27 = vsub.f32 %v405_v18, %v459_v24  ;;  %v467_v28 = vsub.f32 %v457_v22, %v459_v24  ;;  %v1546_v29 = vmax.f32 %v459_v24, %v497_v6 }
 0x306   : > { %v346_v30 = vpop.xlane.xlu0 %345  ;;  %1103 = vpow2.f32 %v416_v26 }
 0x307   : > { %v464_v32 = vmul.f32 1.442695, %v461_v27  ;;  %v501_v33 = vsub.f32 %v459_v24, %v1546_v29  ;;  %v507_v34 = vsub.f32 %v497_v6, %v1546_v29  ;;  %v350_v36 = vmax.f32 %v1529_v43, %v346_v30 }
 0x308   : > { %v470_v37 = vmul.f32 1.442695, %v467_v28 }
 0x309   : > { %1105 = vpow2.f32 %v464_v32  ;;  %v352_v38 = vsub.f32 %v1529_v43, %v350_v36  ;;  %v358_v39 = vsub.f32 %v346_v30, %v350_v36  ;;  %v504_v44 = vmul.f32 1.442695, %v501_v33 }
 0x30a   : > { %v400_v40 = vpop.xlane.xlu0 %399  ;;  %1107 = vpow2.f32 %v314_v35  ;;  %v510_v48 = vmul.f32 1.442695, %v507_v34  ;;  %v321_v43 = vadd.f32 %v1554_v47, %v1552_v41 }
 0x30b   : > { %v404_v42 = vmax.f32 %v350_v36, %v400_v40  ;;  %v354_v45 = vmul.f32 1.442695, %v352_v38  ;;  %v360_v46 = vmul.f32 1.442695, %v358_v39  ;;  %1109 = vpow2.f32 %v470_v37 }
 0x30d   : > { %v406_v49 = vsub.f32 %v350_v36, %v404_v42  ;;  %v412_v50 = vsub.f32 %v400_v40, %v404_v42  ;;  %1111 = vpow2.f32 %v354_v45 }
 0x30e   : > { %v1556_v51 = vpop.eup %1095  ;;  %v454_v52 = vpop.xlane.xlu0 %453  ;;  %1113 = vpow2.f32 %v360_v46 }
 0x30f   : > { %v1098_v53 = vpop.eup %1097  ;;  %v408_v54 = vmul.f32 1.442695, %v406_v49  ;;  %v458_v55 = vmax.f32 %v404_v42, %v454_v52  ;;  %1115 = vpow2.f32 %v504_v44  ;;  %v414_v56 = vmul.f32 1.442695, %v412_v50 }
 0x310   : > { %v371_v57 = vmul.f32 %v1098_v53, %v1495_v13  ;;  %v365_v58 = vmul.f32 %v1556_v51, %v321_v43  ;;  %v1100_v59 = vpop.eup %1099  ;;  %1117 = vpow2.f32 %v510_v48 }
 0x311   : > { %v460_v60 = vsub.f32 %v404_v42, %v458_v55  ;;  %v466_v61 = vsub.f32 %v454_v52, %v458_v55  ;;  %v498_v62 = vmax.f32 %v458_v55, %v1541_v2  ;;  %1119 = vpow2.f32 %v408_v54 }
 0x312   : > { %v1563_v63 = vpop.eup %1101  ;;  %376 = vrot.lane.b32.xlu0 %v371_v57, %s1323_s5  ;;  %v537_v1 = vpop.xlane.xlu0 %536  ;;  %v367_v4 = vadd.f32 %v1098_v53, %v365_v58  ;;  %1121 = vpow2.f32 %v414_v56  ;;  %v1569_v17 = vmul.f32 0.0, %v1100_v59 }
 0x313   : > { %v462_v5 = vmul.f32 1.442695, %v460_v60  ;;  %v468_v6 = vmul.f32 1.442695, %v466_v61  ;;  %v500_v7 = vsub.f32 %v458_v55, %v498_v62  ;;  %v506_v8 = vsub.f32 %v1541_v2, %v498_v62  ;;  %v1104_v12 = vpop.eup %1103  ;;  %v582_v16 = vpop.xlane.xlu1 %581 }
 0x314   : > { %v539_v9 = vmax.f32 %v1546_v29, %v537_v1  ;;  %v419_v11 = vmul.f32 %v1563_v63, %v367_v4  ;;  %v425_v61 = vmul.f32 %v1104_v12, %v1495_v13 }
 0x315   : > { %1123 = vpow2.f32 %v462_v5  ;;  %v502_v14 = vmul.f32 1.442695, %v500_v7  ;;  %v508_v15 = vmul.f32 1.442695, %v506_v8 }
 0x316   : > { %v1571_v18 = vpop.eup %1105  ;;  %1125 = vpow2.f32 %v468_v6  ;;  %v541_v19 = vsub.f32 %v1546_v29, %v539_v9  ;;  %v547_v20 = vsub.f32 %v537_v1, %v539_v9  ;;  %v534_v21 = vpop.xlane.xlu0 %533  ;;  %v421_v2 = vadd.f32 %v1104_v12, %v419_v11 }
 0x317   : > { %1127 = vpow2.f32 %v502_v14  ;;  %v538_v22 = vmax.f32 %v498_v62, %v534_v21  ;;  %v1574_v25 = vpop.eup %1107  ;;  %v630_v34 = vpop.xlane.xlu1 %629 }
 0x318   : > { %1129 = vpow2.f32 %v508_v15  ;;  %v544_v23 = vmul.f32 1.442695, %v541_v19  ;;  %v550_v24 = vmul.f32 1.442695, %v547_v20  ;;  %v473_v30 = vmul.f32 %v1571_v18, %v421_v2  ;;  %v1577_v31 = vpop.eup %1109 }
 0x319   : > { %v540_v26 = vsub.f32 %v498_v62, %v538_v22  ;;  %v546_v27 = vsub.f32 %v534_v21, %v538_v22  ;;  %v586_v28 = vmax.f32 %v538_v22, %v582_v16  ;;  %v320_v29 = vadd.f32 %v1574_v25, %v1569_v17 }
 0x31a   : > { %1131 = vpow2.f32 %v544_v23  ;;  %v585_v32 = vpop.xlane.xlu0 %584  ;;  %v1581_v33 = vpop.eup %1111  ;;  %v475_v44 = vadd.f32 %v1577_v31, %v473_v30 }
 0x31b   : > { %1133 = vpow2.f32 %v550_v24  ;;  %v542_v35 = vmul.f32 1.442695, %v540_v26  ;;  %v548_v36 = vmul.f32 1.442695, %v546_v27  ;;  %v588_v37 = vsub.f32 %v538_v22, %v586_v28  ;;  %v1114_v38 = vpop.eup %1113 }
 0x31c   : > { %v594_v39 = vsub.f32 %v582_v16, %v586_v28  ;;  %v634_v40 = vmax.f32 %v586_v28, %v630_v34  ;;  %v587_v42 = vmax.f32 %v539_v9, %v585_v32  ;;  %v1584_v45 = vpop.eup %1115  ;;  %v370_v48 = vmul.f32 %v1114_v38, %v1490_v10 }
 0x31d   : > { %1135 = vpow2.f32 %v542_v35  ;;  %v590_v46 = vmul.f32 1.442695, %v588_v37  ;;  %v364_v49 = vmul.f32 %v1581_v33, %v320_v29  ;;  %v1588_v50 = vpop.eup %1117  ;;  %v513_v58 = vmul.f32 %v1584_v45, %v475_v44 }
 0x31e   : > { %1137 = vpow2.f32 %v548_v36  ;;  %v596_v52 = vmul.f32 1.442695, %v594_v39  ;;  %v589_v43 = vsub.f32 %v539_v9, %v587_v42  ;;  %v595_v53 = vsub.f32 %v585_v32, %v587_v42  ;;  %v633_v54 = vpop.xlane.xlu0 %632  ;;  %v1590_v55 = vpop.eup %1119  ;;  %374 = vrot.lane.b32.xlu1 %v370_v48, %s1323_s5 }
 0x31f   : > { %1139 = vpow2.f32 %v590_v46  ;;  %v635_v56 = vmax.f32 %v587_v42, %v633_v54  ;;  %v642_v57 = vsub.f32 %v630_v34, %v634_v40  ;;  %v1122_v62 = vpop.eup %1121  ;;  %v515_v6 = vadd.f32 %v1588_v50, %v513_v58 }
 0x320   : > { %v592_v59 = vmul.f32 1.442695, %v589_v43  ;;  %v598_v60 = vmul.f32 1.442695, %v595_v53  ;;  %1141 = vpow2.f32 %v596_v52  ;;  %v366_v8 = vadd.f32 %v1114_v38, %v364_v49 }
 0x321   : > { %v637_v1 = vsub.f32 %v587_v42, %v635_v56  ;;  %v643_v4 = vsub.f32 %v633_v54, %v635_v56  ;;  %v644_v5 = vmul.f32 1.442695, %v642_v57  ;;  %v636_v9 = vsub.f32 %v586_v28, %v634_v40 }
 0x322   : > { %v1596_v7 = vpop.eup %1123  ;;  %1143 = vpow2.f32 %v592_v59  ;;  %430 = vrot.lane.b32.xlu1 %v425_v61, %s1322_s19  ;;  %v418_v19 = vmul.f32 %v1590_v55, %v366_v8  ;;  %v424_v21 = vmul.f32 %v1122_v62, %v1490_v10  ;;  %v479_v28 = vmul.f32 %v1577_v31, %v1495_v13 }
 0x323   : > { %v1126_v11 = vpop.eup %1125  ;;  %1145 = vpow2.f32 %v598_v60  ;;  %v640_v14 = vmul.f32 1.442695, %v637_v1  ;;  %v646_v15 = vmul.f32 1.442695, %v643_v4  ;;  %v638_v22 = vmul.f32 1.442695, %v636_v9 }
 0x324   : > { %v1599_v16 = vpop.eup %1127  ;;  %v478_v12 = vmul.f32 %v1126_v11, %v1490_v10  ;;  %1147 = vpow2.f32 %v644_v5  ;;  %v420_v2 = vadd.f32 %v1122_v62, %v418_v19 }
 0x325   : > { %v1603_v20 = vpop.eup %1129  ;;  %1149 = vpow2.f32 %v640_v14 }
 0x326   : > { %1151 = vpow2.f32 %v646_v15  ;;  %482 = vrot.lane.b32.xlu0 %v478_v12, %s1321_s21  ;;  %428 = vrot.lane.b32.xlu1 %v424_v21, %s1322_s19  ;;  %v472_v27 = vmul.f32 %v1596_v7, %v420_v2  ;;  %v322_v12 = vmul.f32 %v1574_v25, %v1490_v10 }
 0x327   : > { %v1607_v23 = vpop.eup %1131  ;;  %1153 = vpow2.f32 %v638_v22 }
 0x328   : > { %v1134_v24 = vpop.eup %1133  ;;  %v553_v26 = vmul.f32 %v1607_v23, %v515_v6  ;;  %v474_v32 = vadd.f32 %v1126_v11, %v472_v27  ;;  %v323_v6 = vmul.f32 %v1554_v47, %v1495_v13  ;;  %v324_v19 = vadd.f32 %v322_v12, %v1569_v17 }
 0x329   : > { %v559_v39 = vmul.f32 %v1134_v24, %v1470_v3 }
 0x32a   : > { %v1614_v30 = vpop.eup %1135  ;;  %v555_v29 = vadd.f32 %v1134_v24, %v553_v26  ;;  %484 = vrot.lane.b32.xlu1 %v479_v28, %s1321_s21  ;;  %v512_v37 = vmul.f32 %v1599_v16, %v474_v32  ;;  %v325_v8 = vadd.f32 %v323_v6, %v1552_v41  ;;  %v368_v21 = vmul.f32 %v1581_v33, %v324_v19 }
 0x32b   : > { %v1138_v34 = vpop.eup %1137  ;;  %v519_v33 = vmul.f32 %v1588_v50, %v1470_v3 }
 0x32c   : > { %v1617_v35 = vpop.eup %1139  ;;  %v558_v36 = vmul.f32 %v1138_v34, %v1464_v0  ;;  %v514_v31 = vadd.f32 %v1603_v20, %v512_v37  ;;  %v369_v9 = vmul.f32 %v1556_v51, %v325_v8 }
 0x32d   : > { %v1142_v38 = vpop.eup %1141 }
 0x32e   : > { %562 = vrot.lane.b32.xlu0 %v558_v36, %s1323_s5  ;;  %564 = vrot.lane.b32.xlu1 %v559_v39, %s1323_s5  ;;  %v606_v44 = vmul.f32 %v1142_v38, %v1464_v0  ;;  %v552_v46 = vmul.f32 %v1614_v30, %v514_v31 }
 0x32f   : > { %v1624_v40 = vpop.eup %1143 }
 0x330   : > { %v1146_v42 = vpop.eup %1145  ;;  %v601_v48 = vmul.f32 %v1624_v40, %v555_v29  ;;  %v554_v54 = vadd.f32 %v1138_v34, %v552_v46 }
 0x331   : > { %v1148_v49 = vpop.eup %1147  ;;  %v607_v52 = vmul.f32 %v1146_v42, %v1470_v3 }
 0x332   : > { %v1150_v43 = vpop.eup %1149  ;;  %610 = vrot.lane.b32.xlu0 %v606_v44, %s1322_s19  ;;  %v603_v53 = vadd.f32 %v1146_v42, %v601_v48  ;;  %v654_v57 = vmul.f32 %v1148_v49, %v1464_v0  ;;  %v600_v60 = vmul.f32 %v1617_v35, %v554_v54 }
 0x333   : > { %v1152_v56 = vpop.eup %1151  ;;  %612 = vrot.lane.b32.xlu1 %v607_v52, %s1322_s19 }
 0x334   : > { %v655_v58 = vmul.f32 %v1152_v56, %v1470_v3  ;;  %v649_v59 = vmul.f32 %v1150_v43, %v603_v53  ;;  %v602_v62 = vadd.f32 %v1142_v38, %v600_v60  ;;  %v1154_v1 = vpop.eup %1153 }
 0x336   : > { %658 = vrot.lane.b32.xlu0 %v654_v57, %s1321_s21  ;;  %v651_v61 = vadd.f32 %v1152_v56, %v649_v59  ;;  %v648_v4 = vmul.f32 %v1154_v1, %v602_v62 }
 0x337   : > { %660 = vrot.lane.b32.xlu1 %v655_v58, %s1321_s21 }
 0x338   : > { %v650_v5 = vadd.f32 %v1148_v49, %v648_v4  ;;  %1155 = vrcp.f32 %v651_v61 }
 0x33a   : > { %1157 = vrcp.f32 %v650_v5 }
 0x345   : > { %v1156_v48 = vpop.eup %1155 }
 0x347   : > { %v1158_v52 = vpop.eup %1157 }
 0x384   : > { %v377_v11 = vpop.permute.xlu0 %376 }
 0x385   : > { %v381_v14 = vadd.f32 %v377_v11, %v369_v9 }
 0x387   : > { %v423_v15 = vmul.f32 %v1563_v63, %v381_v14 }
 0x390   : > { %v375_v2 = vpop.permute.xlu1 %374 }
 0x391   : > { %v380_v22 = vadd.f32 %v375_v2, %v368_v21 }
 0x393   : > { %v422_v24 = vmul.f32 %v1590_v55, %v380_v22  ;;  %v518_v55 = vmul.f32 %v1603_v20, %v1464_v0 }
 0x394   : > { %v431_v13 = vpop.permute.xlu1 %430 }
 0x395   : > { %v435_v47 = vadd.f32 %v431_v13, %v423_v15 }
 0x397   : > { %v477_v41 = vmul.f32 %v1571_v18, %v435_v47 }
 0x398   : > { %v429_v51 = vpop.permute.xlu1 %428  ;;  %v483_v63 = vpop.permute.xlu0 %482 }
 0x399   : > { %v434_v26 = vadd.f32 %v429_v51, %v422_v24 }
 0x39b   : > { %v476_v27 = vmul.f32 %v1596_v7, %v434_v26 }
 0x39c   : > { %v485_v28 = vpop.permute.xlu1 %484 }
 0x39d   : > { %v488_v32 = vadd.f32 %v483_v63, %v476_v27  ;;  %v489_v10 = vadd.f32 %v485_v28, %v477_v41 }
 0x39f   : > { %v516_v17 = vmul.f32 %v1599_v16, %v488_v32  ;;  %v517_v25 = vmul.f32 %v1584_v45, %v489_v10 }
 0x3a0   : > { %v565_v29 = vpop.permute.xlu1 %564  ;;  %v563_v18 = vpop.permute.xlu0 %562 }
 0x3a1   : > { %v521_v34 = vadd.f32 %v519_v33, %v517_v25  ;;  %v520_v7 = vadd.f32 %v518_v55, %v516_v17 }
 0x3a3   : > { %v557_v36 = vmul.f32 %v1607_v23, %v521_v34  ;;  %v556_v37 = vmul.f32 %v1614_v30, %v520_v7 }
 0x3a4   : > { %v611_v39 = vpop.permute.xlu0 %610 }
 0x3a5   : > { %v569_v16 = vadd.f32 %v565_v29, %v557_v36  ;;  %v568_v38 = vadd.f32 %v563_v18, %v556_v37  ;;  %v613_v45 = vpop.permute.xlu1 %612 }
 0x3a7   : > { %v605_v3 = vmul.f32 %v1624_v40, %v569_v16  ;;  %v604_v50 = vmul.f32 %v1617_v35, %v568_v38 }
 0x3a8   : > { %v659_v46 = vpop.permute.xlu0 %658 }
 0x3a9   : > { %v617_v0 = vadd.f32 %v613_v45, %v605_v3  ;;  %v616_v20 = vadd.f32 %v611_v39, %v604_v50  ;;  %v661_v44 = vpop.permute.xlu1 %660 }
 0x3ab   : > { %v653_v31 = vmul.f32 %v1150_v43, %v617_v0  ;;  %v652_v42 = vmul.f32 %v1154_v1, %v616_v20 }
 0x3ad   : > { %v665_v49 = vadd.f32 %v661_v44, %v653_v31  ;;  %v664_v23 = vadd.f32 %v659_v46, %v652_v42  ;;  %678 = sbr.rel (!%p1720_p5) target bundleno = 985 (0x3d9), region = 40 }
 0x3af   : > { %v669_v30 = vmul.f32 %v1156_v48, %v665_v49  ;;  %v667_v53 = vmul.f32 %v1158_v52, %v664_v23 }
 0x3b1   : > { %671 = vst.msk [vmem:[%s1661_s18 + $0x8] sm:$0xff] %vm204_vm0, %v669_v30  ;;  %670 = vst.msk [vmem:[%s1661_s18] sm:$0xff] %vm204_vm0, %v667_v53 }
 0x3b2   : > { %s1728_s24 = smov (!%p681_p11, %s680_s24), 2 }
 0x3b3   : > { %s938_s27 = sshll.u32 %s1728_s24, 7 }
 0x3b4   : > { %p941_p4 = scmp.eq.s32.totalorder %s938_s27, 0 }
 0x3b5   : > { %s1680_s20 = sshrl.u32 (!%p941_p4), %s1728_s24, 1 }
 0x3b6   : > { %689 = sbr.rel (%p941_p4) target bundleno = 985 (0x3d9), region = 44  ;;  %p942_p2 = scmp.le.s32.totalorder (!%p941_p4), %s1680_s20, 0 }
 0x3bb   : > { %857 = sbr.rel (%p942_p2) target bundleno = 968 (0x3c8), region = 126  ;;  %s1283_s13 = smov (!%p942_p2), %s1674_s26  }
 0x3bc   : > { %s1287_s28 = smov (!%p942_p2), %s1661_s18   ;;  %s1291_s29 = smov (!%p942_p2), 0  }
 0x3bd   : > { %s1295_s30 = smov (!%p942_p2), 0  }
 0x3c0 LB: >> { %v754_v35 = vld [vmem:[%s1289_s28] sm:$0xff]  ;;  %v756_v40 = vld [vmem:[%s1289_s28 + $0x8] sm:$0xff]  ;;  %s758_s3 = sadd.s32 1, %s1293_s29  ;;  %s748_s30 = sadd.s32 1, %s1297_s30   ;;  %s1297_s30 = sphi %s1295_s30, %s748_s30   ;;  %s1293_s29 = sphi %s1291_s29, %s1292_s29   ;;  %s1289_s28 = sphi %s1287_s28, %s763_s28   ;;  %s1285_s13 = sphi %s1283_s13, %s764_s13  }
 0x3c1   : >> { %755 = vst [vmem:[%s1285_s13] sm:$0xff] %v754_v35  ;;  %757 = vst [vmem:[%s1285_s13 + $0x8] sm:$0xff] %v756_v40  ;;  %p759_p3 = scmp.ge.s32.totalorder %s758_s3, %s1680_s20  ;;  %p747_p1 = scmp.ge.s32.totalorder %s748_s30, %s1680_s20 }
 0x3c3   : >> { %s1730_s3 = smov (%p759_p3, %s758_s3), 0  ;;  %750 = sbr.rel (!%p747_p1) target bundleno = 960 (0x3c0), region = 132 }
 0x3c4   : >> { %s943_s4 = sshll.u32 %s1730_s3, 4  ;;  %s1292_s29 = smov %s1730_s3  }
 0x3c5   : >> { %s763_s28 = scalar_lea.vmem %s1661_s18, %s943_s4 [#allocation6]   ;;  %s764_s13 = scalar_lea.vmem %s1674_s26, %s943_s4  }
 0x3c8 PF: > { %s1690_s6 = sand.u32 1, %s1728_s24   ;;  %s957_s8 = sshll.u32 %s1680_s20, 4 }
 0x3c9   : > { %s769_s9 = scalar_lea.vmem %s1661_s18, %s957_s8 [#allocation6]   ;;  %s771_s15 = scalar_lea.vmem %s1674_s26, %s957_s8  }
 0x3ca   : > { %p948_p6 = scmp.le.s32.totalorder %s1690_s6, 0 }
 0x3cb   : > { %s1299_s16 = smov (!%p948_p6), %s771_s15   ;;  %s1303_s21 = smov (!%p948_p6), %s769_s9  }
 0x3cc   : > { %871 = sbr.rel (%p948_p6) target bundleno = 985 (0x3d9), region = 137  ;;  %s1307_s19 = smov (!%p948_p6), 0  }
 0x3cd   : > { %s1311_s5 = smov (!%p948_p6), 0  }
 0x3d1 LB: >> { %v781_v43 = vld [vmem:[%s1305_s21] sm:$0xff]  ;;  %s783_s7 = sadd.s32 1, %s1309_s19  ;;  %s775_s5 = sadd.s32 1, %s1313_s5   ;;  %s1313_s5 = sphi %s1311_s5, %s775_s5   ;;  %s1309_s19 = sphi %s1307_s19, %s1308_s19   ;;  %s1305_s21 = sphi %s1303_s21, %s788_s21   ;;  %s1301_s16 = sphi %s1299_s16, %s789_s16  }
 0x3d2   : >> { %782 = vst [vmem:[%s1301_s16] sm:$0xff] %v781_v43  ;;  %p784_p7 = scmp.ge.s32.totalorder %s783_s7, %s1690_s6  ;;  %p774_p9 = scmp.ge.s32.totalorder %s775_s5, %s1690_s6 }
 0x3d4   : >> { %s1732_s7 = smov (%p784_p7, %s783_s7), 0  ;;  %777 = sbr.rel (!%p774_p9) target bundleno = 977 (0x3d1), region = 143 }
 0x3d5   : >> { %s949_s18 = sshll.u32 %s1732_s7, 3  ;;  %s1308_s19 = smov %s1732_s7  }
 0x3d6   : >> { %s788_s21 = scalar_lea.vmem %s769_s9, %s949_s18 [#allocation6]   ;;  %s789_s16 = scalar_lea.vmem %s771_s15, %s949_s18  }
 0x3d9 PF: > { %p13_p8 = scmp.ge.s32.totalorder %s1361_s14, 9   ;;  %s1721_s9 = smov %s1273_s10 }
 0x3da   : > { %s1722_s10 = smov %s1277_s11  ;;  %s1723_s11 = smov %s1371_s17 }
 0x3db   : > { %s1724_s12 = smov %s1361_s14  ;;  %15 = sbr.rel (!%p13_p8) target bundleno = 4 (0x4), region = 154 }
 0x3e0   :  { %805 = vsyncpa [#allocation3], 1 }
 0x3e1   :  { %807 = vsyncpa [#allocation3 + $0x1], 1 }
 0x3e2   :  { %808 = vsyncpa [#allocation5], 1 }

</bundles_post_ra>
